<compile_context>
chip_gen: v6e
topology: v6e:2x2x1
jax: 0.10.0
libtpu: 0.0.40
codegen_flags: <defaults>
</compile_context>

<pallas_src>
import functools

import jax
import jax.numpy as jnp
from jax.experimental import pallas as pl
from jax.experimental.pallas import tpu as pltpu


def _round_up(x, m):
    return ((x + m - 1) // m) * m


def _pick_batch_tile(B):
    """Large lane-aligned tiles; keep >=2 grid steps for v7x's 2 TensorCores."""
    full = _round_up(B, 128)
    tile = min(2048, full)
    if full >= 256:
        tile = min(tile, _round_up(full // 2, 128))
    return max(tile, 128)


def _mlp_kernel(z_ref, w0_ref, b0_ref, wm_ref, bm_ref, wo_ref, bo_ref, out_ref,
                *, n_mid, hidden_dim, slope):
    """Whole Discriminator forward for one batch tile, fused in VMEM.

    Transposed layout: activations are (features, batch_tile) so batch sits in
    the 128-wide lane dimension. All matmuls accumulate in f32 on the MXU.
    """
    def leaky(x):
        return jnp.maximum(x, slope * x)

    # First layer: (H, n_latents) @ (n_latents, tile) -> (H, tile)
    h = jnp.dot(w0_ref[...], z_ref[...], preferred_element_type=jnp.float32)
    h = leaky(h + b0_ref[...])

    # n_mid is small and static -> unrolled python loop (visible to scheduler).
    # Weights are packed as one (n_mid*H, H) resident tile; static sub-slices.
    for l in range(n_mid):
        w = wm_ref[pl.ds(l * hidden_dim, hidden_dim), :]
        b = bm_ref[pl.ds(l * hidden_dim, hidden_dim), :]
        h = leaky(jnp.dot(w, h, preferred_element_type=jnp.float32) + b)

    # Final projection padded to 8 output rows -> (8, tile) lane-dense store.
    out = jnp.dot(wo_ref[...], h, preferred_element_type=jnp.float32) + bo_ref[...]
    out_ref[...] = out.astype(out_ref.dtype)


def init_discriminator_params(key, n_latents=10, nb_layers=6, hidden_dim=32):
    """Deterministic init mimicking nn.Linear default: U(-1/sqrt(fan_in), +1/sqrt(fan_in)).

    Weights are stored in PyTorch (out_features, in_features) layout.
    """
    n_mid = nb_layers - 2
    keys = jax.random.split(key, 2 * (n_mid + 2))

    def lin(kw, kb, fan_in, fan_out):
        bound = float(fan_in) ** -0.5
        w = jax.random.uniform(kw, (fan_out, fan_in), jnp.float32, -bound, bound)
        b = jax.random.uniform(kb, (fan_out,), jnp.float32, -bound, bound)
        return w, b

    w0, b0 = lin(keys[0], keys[1], n_latents, hidden_dim)
    wm_list, bm_list = [], []
    for l in range(n_mid):
        w, b = lin(keys[2 + 2 * l], keys[3 + 2 * l], hidden_dim, hidden_dim)
        wm_list.append(w)
        bm_list.append(b)
    wo, bo = lin(keys[2 + 2 * n_mid], keys[3 + 2 * n_mid], hidden_dim, 2)

    return {
        "w0": w0, "b0": b0,                       # (H, n_latents), (H,)
        "wm": jnp.stack(wm_list, axis=0),          # (n_mid, H, H)
        "bm": jnp.stack(bm_list, axis=0),          # (n_mid, H)
        "wo": wo, "bo": bo,                        # (2, H), (2,)
    }


def prepare_params(params, *, out_sublane_pad=8):
    """One-time layout prep: pack middle layers, pad the tiny head to 8 rows.

    Everything stays f32 (no bf16 casts: the kernel is memory/overhead bound on
    all generations, not MXU bound).
    """
    H = params["w0"].shape[0]
    n_mid = params["wm"].shape[0]
    n_out = params["wo"].shape[0]
    n_out_p = _round_up(n_out, out_sublane_pad)

    wm_packed = params["wm"].reshape(n_mid * H, H).astype(jnp.float32)
    bm_packed = params["bm"].reshape(n_mid * H, 1).astype(jnp.float32)

    wo_p = jnp.zeros((n_out_p, H), jnp.float32).at[:n_out, :].set(
        params["wo"].astype(jnp.float32))
    bo_p = jnp.zeros((n_out_p, 1), jnp.float32).at[:n_out, 0].set(
        params["bo"].astype(jnp.float32))

    prepared = {
        "w0": params["w0"].astype(jnp.float32),              # (H, n_latents)
        "b0": params["b0"].reshape(H, 1).astype(jnp.float32),  # (H, 1)
        "wm": wm_packed,                                      # (n_mid*H, H)
        "bm": bm_packed,                                      # (n_mid*H, 1)
        "wo": wo_p,                                           # (n_out_p, H)
        "bo": bo_p,                                           # (n_out_p, 1)
    }
    return prepared, n_out


def discriminator_forward(z, pparams, *, n_out=2, slope=0.01, batch_tile=None):
    """Run the Discriminator MLP as a single fused Pallas TPU kernel.

    z: (B, n_latents) float32
    pparams: output of prepare_params()
    returns: (B, n_out) float32 logits
    """
    B, n_latents = z.shape
    H = pparams["w0"].shape[0]
    n_mid = pparams["wm"].shape[0] // H
    n_out_p = pparams["wo"].shape[0]

    if batch_tile is None:
        batch_tile = _pick_batch_tile(B)
    batch_tile = max(128, _round_up(batch_tile, 128))

    padded_B = _round_up(B, batch_tile)
    zt = z.T                                   # (n_latents, B): batch -> lanes
    if padded_B != B:
        zt = jnp.pad(zt, ((0, 0), (0, padded_B - B)))

    kernel = functools.partial(_mlp_kernel, n_mid=n_mid, hidden_dim=H,
                               slope=slope)
    grid = (padded_B // batch_tile,)

    # Batch tiled over the grid (lane dimension); all weights have constant
    # index_maps so they stay resident in VMEM across grid steps (~20 KB total).
    in_specs = [
        pl.BlockSpec((n_latents, batch_tile), lambda i: (0, i)),   # z^T tile
        pl.BlockSpec((H, n_latents), lambda i: (0, 0)),            # w0
        pl.BlockSpec((H, 1), lambda i: (0, 0)),                    # b0
        pl.BlockSpec((n_mid * H, H), lambda i: (0, 0)),            # wm (packed)
        pl.BlockSpec((n_mid * H, 1), lambda i: (0, 0)),            # bm (packed)
        pl.BlockSpec((n_out_p, H), lambda i: (0, 0)),              # wo (padded)
        pl.BlockSpec((n_out_p, 1), lambda i: (0, 0)),              # bo (padded)
    ]
    out_specs = pl.BlockSpec((n_out_p, batch_tile), lambda i: (0, i))

    out_t = pl.pallas_call(
        kernel,
        out_shape=jax.ShapeDtypeStruct((n_out_p, padded_B), jnp.float32),
        grid_spec=pltpu.PrefetchScalarGridSpec(
            num_scalar_prefetch=0,
            grid=grid,
            in_specs=in_specs,
            out_specs=out_specs,
        ),
        compiler_params=pltpu.CompilerParams(
            dimension_semantics=("parallel",)),
    )(zt, pparams["w0"], pparams["b0"], pparams["wm"], pparams["bm"],
      pparams["wo"], pparams["bo"])

    # Trivial row slice + tiny (n_out, B) transpose back to PyTorch layout.
    return out_t[:n_out, :B].T


def discriminator_ref(z, params, slope=0.01):
    """Plain-JAX reference for verification (PyTorch-layout params)."""
    h = z @ params["w0"].T + params["b0"]
    h = jnp.where(h > 0, h, slope * h)
    for l in range(params["wm"].shape[0]):
        h = h @ params["wm"][l].T + params["bm"][l]
        h = jnp.where(h > 0, h, slope * h)
    return h @ params["wo"].T + params["bo"]


if __name__ == "__main__":
    key = jax.random.PRNGKey(0)
    k_param, k_z1, k_z2 = jax.random.split(key, 3)

    n_latents = 10
    hidden_dim = 32
    nb_layers = 6
    batch = 16

    params = init_discriminator_params(
        k_param, n_latents=n_latents, nb_layers=nb_layers, hidden_dim=hidden_dim)
    pparams, n_out = prepare_params(params)

    # Main small-shape check (single grid step).
    z = jax.random.normal(k_z1, (batch, n_latents), jnp.float32)
    out = discriminator_forward(z, pparams, n_out=n_out, slope=0.01)
    out = jax.block_until_ready(out)
    ref = discriminator_ref(z, params, slope=0.01)
    assert out.shape == (batch, n_out), out.shape
    assert jnp.allclose(out, ref, atol=1e-4, rtol=1e-4), "mismatch vs reference"

    # Ragged-batch check: exercises wrapper padding + a 2-step parallel grid.
    z2 = jax.random.normal(k_z2, (300, n_latents), jnp.float32)
    out2 = discriminator_forward(z2, pparams, n_out=n_out, slope=0.01)
    out2 = jax.block_until_ready(out2)
    ref2 = discriminator_ref(z2, params, slope=0.01)
    assert out2.shape == (300, n_out), out2.shape
    assert jnp.allclose(out2, ref2, atol=1e-4, rtol=1e-4), "mismatch vs reference (ragged)"

    print("KERNEL_OK")
</pallas_src>

<mosaic_0001>
module attributes {stable_mosaic.version = 11 : i64} {
  func.func @_mlp_kernel(%arg0: i32, %arg1: memref<10x128xf32, #tpu.memory_space<vmem>>, %arg2: memref<32x10xf32, #tpu.memory_space<vmem>>, %arg3: memref<32x1xf32, #tpu.memory_space<vmem>>, %arg4: memref<128x32xf32, #tpu.memory_space<vmem>>, %arg5: memref<128x1xf32, #tpu.memory_space<vmem>>, %arg6: memref<8x32xf32, #tpu.memory_space<vmem>>, %arg7: memref<8x1xf32, #tpu.memory_space<vmem>>, %arg8: memref<8x128xf32, #tpu.memory_space<vmem>>) attributes {dimension_semantics = [#tpu.dimension_semantics<parallel>], iteration_bounds = array<i64: 1>, scalar_prefetch = 0 : i64, scratch_operands = 0 : i64, tpu.core_type = #tpu.core_type<tc>, window_params = [{transform_indices = @transform_0, window_bounds = array<i64: 10, 128>}, {pipeline_mode = #tpu.pipeline_mode<synchronous>, transform_indices = @transform_1, window_bounds = array<i64: 32, 10>}, {pipeline_mode = #tpu.pipeline_mode<synchronous>, transform_indices = @transform_2, window_bounds = array<i64: 32, 1>}, {pipeline_mode = #tpu.pipeline_mode<synchronous>, transform_indices = @transform_3, window_bounds = array<i64: 128, 32>}, {pipeline_mode = #tpu.pipeline_mode<synchronous>, transform_indices = @transform_4, window_bounds = array<i64: 128, 1>}, {pipeline_mode = #tpu.pipeline_mode<synchronous>, transform_indices = @transform_5, window_bounds = array<i64: 8, 32>}, {pipeline_mode = #tpu.pipeline_mode<synchronous>, transform_indices = @transform_6, window_bounds = array<i64: 8, 1>}, {transform_indices = @transform_7, window_bounds = array<i64: 8, 128>}]} {
    %c0 = arith.constant 0 : index
    %c0_0 = arith.constant 0 : index
    %0 = vector.load %arg2[%c0, %c0_0] : memref<32x10xf32, #tpu.memory_space<vmem>>, vector<32x10xf32>
    %c0_1 = arith.constant 0 : index
    %c0_2 = arith.constant 0 : index
    %1 = vector.load %arg1[%c0_1, %c0_2] : memref<10x128xf32, #tpu.memory_space<vmem>>, vector<10x128xf32>
    %cst = arith.constant dense<0.000000e+00> : vector<32x128xf32>
    %2 = tpu.matmul %0, %1, %cst {dimension_numbers = #tpu.dot_dimension_numbers<[1], [0], [0], [1], [0, 0, 1, 1], [], []>} : vector<32x10xf32>, vector<10x128xf32>, vector<32x128xf32> -> vector<32x128xf32>
    %c0_3 = arith.constant 0 : index
    %c0_4 = arith.constant 0 : index
    %3 = vector.load %arg3[%c0_3, %c0_4] : memref<32x1xf32, #tpu.memory_space<vmem>>, vector<32x1xf32>
    %4 = vector.broadcast %3 : vector<32x1xf32> to vector<32x128xf32>
    %5 = arith.addf %2, %4 : vector<32x128xf32>
    %cst_5 = arith.constant 0.00999999977 : f32
    %6 = vector.broadcast %cst_5 : f32 to vector<32x128xf32>
    %7 = arith.mulf %6, %5 : vector<32x128xf32>
    %8 = arith.maximumf %5, %7 : vector<32x128xf32>
    %c0_6 = arith.constant 0 : index
    %c0_7 = arith.constant 0 : index
    %9 = vector.load %arg4[%c0_6, %c0_7] : memref<128x32xf32, #tpu.memory_space<vmem>>, vector<32x32xf32>
    %c0_8 = arith.constant 0 : index
    %c0_9 = arith.constant 0 : index
    %10 = vector.load %arg5[%c0_8, %c0_9] : memref<128x1xf32, #tpu.memory_space<vmem>>, vector<32x1xf32>
    %cst_10 = arith.constant dense<0.000000e+00> : vector<32x128xf32>
    %11 = tpu.matmul %9, %8, %cst_10 {dimension_numbers = #tpu.dot_dimension_numbers<[1], [0], [0], [1], [0, 0, 1, 1], [], []>} : vector<32x32xf32>, vector<32x128xf32>, vector<32x128xf32> -> vector<32x128xf32>
    %12 = vector.broadcast %10 : vector<32x1xf32> to vector<32x128xf32>
    %13 = arith.addf %11, %12 : vector<32x128xf32>
    %cst_11 = arith.constant 0.00999999977 : f32
    %14 = vector.broadcast %cst_11 : f32 to vector<32x128xf32>
    %15 = arith.mulf %14, %13 : vector<32x128xf32>
    %16 = arith.maximumf %13, %15 : vector<32x128xf32>
    %c32 = arith.constant 32 : index
    %c0_12 = arith.constant 0 : index
    %17 = vector.load %arg4[%c32, %c0_12] : memref<128x32xf32, #tpu.memory_space<vmem>>, vector<32x32xf32>
    %c32_13 = arith.constant 32 : index
    %c0_14 = arith.constant 0 : index
    %18 = vector.load %arg5[%c32_13, %c0_14] : memref<128x1xf32, #tpu.memory_space<vmem>>, vector<32x1xf32>
    %cst_15 = arith.constant dense<0.000000e+00> : vector<32x128xf32>
    %19 = tpu.matmul %17, %16, %cst_15 {dimension_numbers = #tpu.dot_dimension_numbers<[1], [0], [0], [1], [0, 0, 1, 1], [], []>} : vector<32x32xf32>, vector<32x128xf32>, vector<32x128xf32> -> vector<32x128xf32>
    %20 = vector.broadcast %18 : vector<32x1xf32> to vector<32x128xf32>
    %21 = arith.addf %19, %20 : vector<32x128xf32>
    %cst_16 = arith.constant 0.00999999977 : f32
    %22 = vector.broadcast %cst_16 : f32 to vector<32x128xf32>
    %23 = arith.mulf %22, %21 : vector<32x128xf32>
    %24 = arith.maximumf %21, %23 : vector<32x128xf32>
    %c64 = arith.constant 64 : index
    %c0_17 = arith.constant 0 : index
    %25 = vector.load %arg4[%c64, %c0_17] : memref<128x32xf32, #tpu.memory_space<vmem>>, vector<32x32xf32>
    %c64_18 = arith.constant 64 : index
    %c0_19 = arith.constant 0 : index
    %26 = vector.load %arg5[%c64_18, %c0_19] : memref<128x1xf32, #tpu.memory_space<vmem>>, vector<32x1xf32>
    %cst_20 = arith.constant dense<0.000000e+00> : vector<32x128xf32>
    %27 = tpu.matmul %25, %24, %cst_20 {dimension_numbers = #tpu.dot_dimension_numbers<[1], [0], [0], [1], [0, 0, 1, 1], [], []>} : vector<32x32xf32>, vector<32x128xf32>, vector<32x128xf32> -> vector<32x128xf32>
    %28 = vector.broadcast %26 : vector<32x1xf32> to vector<32x128xf32>
    %29 = arith.addf %27, %28 : vector<32x128xf32>
    %cst_21 = arith.constant 0.00999999977 : f32
    %30 = vector.broadcast %cst_21 : f32 to vector<32x128xf32>
    %31 = arith.mulf %30, %29 : vector<32x128xf32>
    %32 = arith.maximumf %29, %31 : vector<32x128xf32>
    %c96 = arith.constant 96 : index
    %c0_22 = arith.constant 0 : index
    %33 = vector.load %arg4[%c96, %c0_22] : memref<128x32xf32, #tpu.memory_space<vmem>>, vector<32x32xf32>
    %c96_23 = arith.constant 96 : index
    %c0_24 = arith.constant 0 : index
    %34 = vector.load %arg5[%c96_23, %c0_24] : memref<128x1xf32, #tpu.memory_space<vmem>>, vector<32x1xf32>
    %cst_25 = arith.constant dense<0.000000e+00> : vector<32x128xf32>
    %35 = tpu.matmul %33, %32, %cst_25 {dimension_numbers = #tpu.dot_dimension_numbers<[1], [0], [0], [1], [0, 0, 1, 1], [], []>} : vector<32x32xf32>, vector<32x128xf32>, vector<32x128xf32> -> vector<32x128xf32>
    %36 = vector.broadcast %34 : vector<32x1xf32> to vector<32x128xf32>
    %37 = arith.addf %35, %36 : vector<32x128xf32>
    %cst_26 = arith.constant 0.00999999977 : f32
    %38 = vector.broadcast %cst_26 : f32 to vector<32x128xf32>
    %39 = arith.mulf %38, %37 : vector<32x128xf32>
    %40 = arith.maximumf %37, %39 : vector<32x128xf32>
    %c0_27 = arith.constant 0 : index
    %c0_28 = arith.constant 0 : index
    %41 = vector.load %arg6[%c0_27, %c0_28] : memref<8x32xf32, #tpu.memory_space<vmem>>, vector<8x32xf32>
    %cst_29 = arith.constant dense<0.000000e+00> : vector<8x128xf32>
    %42 = tpu.matmul %41, %40, %cst_29 {dimension_numbers = #tpu.dot_dimension_numbers<[1], [0], [0], [1], [0, 0, 1, 1], [], []>} : vector<8x32xf32>, vector<32x128xf32>, vector<8x128xf32> -> vector<8x128xf32>
    %c0_30 = arith.constant 0 : index
    %c0_31 = arith.constant 0 : index
    %43 = vector.load %arg7[%c0_30, %c0_31] : memref<8x1xf32, #tpu.memory_space<vmem>>, vector<8x1xf32>
    %44 = vector.broadcast %43 : vector<8x1xf32> to vector<8x128xf32>
    %45 = arith.addf %42, %44 : vector<8x128xf32>
    %c0_32 = arith.constant 0 : index
    %c0_33 = arith.constant 0 : index
    %46 = vector.load %arg8[%c0_32, %c0_33] : memref<8x128xf32, #tpu.memory_space<vmem>>, vector<8x128xf32>
    tpu.vector_store %arg8[%c0_32, %c0_33], %45 {strides = array<i32>} : memref<8x128xf32, #tpu.memory_space<vmem>>, vector<8x128xf32>,
    return
  }
  func.func @transform_0(%arg0: i32) -> (i32, i32) {
    %c0_i32 = arith.constant 0 : i32
    %c0_i32_0 = arith.constant 0 : i32
    return %c0_i32, %arg0 : i32, i32
  }
  func.func @transform_1(%arg0: i32) -> (i32, i32) {
    %c0_i32 = arith.constant 0 : i32
    %c0_i32_0 = arith.constant 0 : i32
    %c0_i32_1 = arith.constant 0 : i32
    return %c0_i32, %c0_i32_0 : i32, i32
  }
  func.func @transform_2(%arg0: i32) -> (i32, i32) {
    %c0_i32 = arith.constant 0 : i32
    %c0_i32_0 = arith.constant 0 : i32
    %c0_i32_1 = arith.constant 0 : i32
    return %c0_i32, %c0_i32_0 : i32, i32
  }
  func.func @transform_3(%arg0: i32) -> (i32, i32) {
    %c0_i32 = arith.constant 0 : i32
    %c0_i32_0 = arith.constant 0 : i32
    %c0_i32_1 = arith.constant 0 : i32
    return %c0_i32, %c0_i32_0 : i32, i32
  }
  func.func @transform_4(%arg0: i32) -> (i32, i32) {
    %c0_i32 = arith.constant 0 : i32
    %c0_i32_0 = arith.constant 0 : i32
    %c0_i32_1 = arith.constant 0 : i32
    return %c0_i32, %c0_i32_0 : i32, i32
  }
  func.func @transform_5(%arg0: i32) -> (i32, i32) {
    %c0_i32 = arith.constant 0 : i32
    %c0_i32_0 = arith.constant 0 : i32
    %c0_i32_1 = arith.constant 0 : i32
    return %c0_i32, %c0_i32_0 : i32, i32
  }
  func.func @transform_6(%arg0: i32) -> (i32, i32) {
    %c0_i32 = arith.constant 0 : i32
    %c0_i32_0 = arith.constant 0 : i32
    %c0_i32_1 = arith.constant 0 : i32
    return %c0_i32, %c0_i32_0 : i32, i32
  }
  func.func @transform_7(%arg0: i32) -> (i32, i32) {
    %c0_i32 = arith.constant 0 : i32
    %c0_i32_0 = arith.constant 0 : i32
    return %c0_i32, %arg0 : i32, i32
  }
}

</mosaic_0001>

<bundles_post_ra>
// kernel: tpu_custom_call.1
= control target key start
LH: loop header
LB: loop body
LE: loop exit
PB: predicated region body
PF: predicated region fallthrough
CT: control target
= control target key end

     0   :  { %vm70_vm0 = vcmask 1041408   ;;  %vm57_vm1 = vcmask 80896   ;;  %v965_v4 = vmov 0   ;;  %s1165_s0 = inlined_call_operand.vmem [shape: f32[10,128], index: 0, kind: input, shape index: {}]   ;;  %s1166_s1 = inlined_call_operand.vmem [shape: f32[32,10], index: 1, kind: input, shape index: {}]   ;;  %s1167_s2 = inlined_call_operand.vmem [shape: f32[32,1], index: 2, kind: input, shape index: {}]   ;;  %s1168_s3 = inlined_call_operand.vmem [shape: f32[128,32], index: 3, kind: input, shape index: {}]   ;;  %s1169_s4 = inlined_call_operand.vmem [shape: f32[128,1], index: 4, kind: input, shape index: {}]   ;;  %s1170_s5 = inlined_call_operand.vmem [shape: f32[8,32], index: 5, kind: input, shape index: {}]   ;;  %s1171_s6 = inlined_call_operand.vmem [shape: f32[8,1], index: 6, kind: input, shape index: {}]   ;;  %s1172_s7 = inlined_call_operand.hbm [shape: f32[8,128], index: 7, kind: output, shape index: {}]  }
   0x1   :  { %v32_v0 = vld [vmem:[%s1165_s0 + $0x8] sm:$0x3]  ;;  %v31_v1 = vld [vmem:[%s1165_s0] sm:$0xff]  ;;  %941 = vset.pattern.permute.xlu0 %v965_v4  ;;  %v36_v5 = vld [vmem:[%s1167_s2 + $0x18] sm:$0xff]  ;;  %942 = vset.pattern.permute.xlu1 %v965_v4 }
   0x2   :  { %v27_v2 = vld [vmem:[%s1166_s1] sm:$0xff]  ;;  %860 = vmatprep.subr.msk.mxu0 %vm70_vm0, %v32_v0  ;;  %v28_v3 = vld [vmem:[%s1166_s1 + $0x8] sm:$0xff]  ;;  %v29_v6 = vld [vmem:[%s1166_s1 + $0x10] sm:$0xff]  ;;  %54 = vperm.xlu0 %941, %v36_v5  }
   0x3   :  { %864 = vmatprep.mubr.msk.f32.mxu0 %vm57_vm1, %v27_v2  ;;  %861 = vmatpush3.msk.msra.mxu0 %vm70_vm0, %v32_v0  ;;  %v34_v7 = vld [vmem:[%s1167_s2 + $0x8] sm:$0xff]  ;;  %v35_v8 = vld [vmem:[%s1167_s2 + $0x10] sm:$0xff]  ;;  %v30_v9 = vld [vmem:[%s1166_s1 + $0x18] sm:$0xff] }
   0x4   :  { %862 = vmatprep.subr.mxu0 %v31_v1  ;;  %44 = vperm.xlu1 %942, %v34_v7   ;;  %v33_v10 = vld [vmem:[%s1167_s2] sm:$0xff]  ;;  %v174_v11 = vld [vmem:[%s1169_s4 + $0x18] sm:$0xff] }
   0x5   :  { %863 = vmatpush3.msra.mxu0 %v31_v1 }
   0x6   :  { %865 = vmatmul.mubr.msk.f32.vlgmr.msra.gmra.mxu0 %vm57_vm1, %v28_v3  ;;  %49 = vperm.xlu0 %941, %v35_v8  }
   0x7   :  { %867 = vmatprep.mubr.msk.f32.mxu0 %vm57_vm1, %v29_v6 }
   0x8   :  { %39 = vperm.xlu1 %942, %v33_v10  }
   0xa   :  { %868 = vmatmul.mubr.msk.f32.gmra.mxu0 %vm57_vm1, %v30_v9 }
   0xb   :  { %12 = vsyncpa [#allocation3], 0  ;;  %v173_v12 = vld [vmem:[%s1169_s4 + $0x10] sm:$0xff]  ;;  %192 = vperm.xlu0 %941, %v174_v11   ;;  %v172_v13 = vld [vmem:[%s1169_s4 + $0x8] sm:$0xff]  ;;  %vm195_vm2 = vcmask 261120   ;;  %vm967_vm3 = vmmov 0  }
   0xc   :  { %187 = vperm.xlu1 %942, %v173_v12   ;;  %v171_v14 = vld [vmem:[%s1169_s4] sm:$0xff]  ;;  %v308_v15 = vld [vmem:[%s1169_s4 + $0x38] sm:$0xff]  ;;  %v307_v16 = vld [vmem:[%s1169_s4 + $0x30] sm:$0xff]  ;;  %s968_s29 = smov [#allocation2]  }
   0xd   :  { %v306_v17 = vld [vmem:[%s1169_s4 + $0x28] sm:$0xff]  ;;  %v305_v18 = vld [vmem:[%s1169_s4 + $0x20] sm:$0xff]  ;;  %v441_v19 = vld [vmem:[%s1169_s4 + $0x58] sm:$0xff]  ;;  %s787_s30 = sshll.u32 %s968_s29, 4  ;;  %s788_s30 = int_to_ptr.vmem [resolvable:$true] %s787_s30 }
   0xe   :  { %v440_v20 = vld [vmem:[%s1169_s4 + $0x50] sm:$0xff]  ;;  %v439_v21 = vld [vmem:[%s1169_s4 + $0x48] sm:$0xff]  ;;  %v438_v22 = vld [vmem:[%s1169_s4 + $0x40] sm:$0xff]  ;;  %s943_s8 = scalar_lea.vmem %s788_s30, 128  ;;  %p948_p1 = scmp.lt.s32.totalorder %s788_s30, %s788_s30 }
   0xf   :  { %182 = vperm.xlu0 %941, %v172_v13   ;;  %v574_v23 = vld [vmem:[%s1169_s4 + $0x78] sm:$0xff]  ;;  %v573_v24 = vld [vmem:[%s1169_s4 + $0x70] sm:$0xff]  ;;  %v572_v25 = vld [vmem:[%s1169_s4 + $0x68] sm:$0xff]  ;;  %p944_p0 = scmp.ne.s32.totalorder %s788_s30, %s943_s8  ;;  %p949_p2 = scmp.lt.s32.totalorder %s943_s8, %s943_s8 }
  0x10   :  { %177 = vperm.xlu1 %942, %v171_v14   ;;  %v571_v26 = vld [vmem:[%s1169_s4 + $0x60] sm:$0xff]  ;;  %v168_v49 = vld [vmem:[%s1168_s3 + $0x8] sm:$0xff]  ;;  %v169_v50 = vld [vmem:[%s1168_s3 + $0x10] sm:$0xff] }
  0x11   :  { %v701_v27 = vld [vmem:[%s1171_s6] sm:$0xff]  ;;  %v170_v51 = vld [vmem:[%s1168_s3 + $0x18] sm:$0xff]  ;;  %v302_v9 = vld [vmem:[%s1168_s3 + $0x28] sm:$0xff]  ;;  %p950_p3 = por %p949_p2, %p948_p1 }
  0x12   :  { %v167_v28 = vld [vmem:[%s1168_s3] sm:$0xff]  ;;  %v303_v10 = vld [vmem:[%s1168_s3 + $0x30] sm:$0xff]  ;;  %v304_v11 = vld [vmem:[%s1168_s3 + $0x38] sm:$0xff] }
  0x13   :  { %326 = vperm.xlu0 %941, %v308_v15   ;;  %878 = vmatprep.mubr.msk.f32.mxu1 %vm195_vm2, %v167_v28  ;;  %v301_v52 = vld [vmem:[%s1168_s3 + $0x20] sm:$0xff]  ;;  %p951_p4 = pnand %p950_p3, %p944_p0 }
  0x14   :  { %321 = vperm.xlu1 %942, %v307_v16   ;;  %892 = vmatprep.mubr.msk.f32.mxu0 %vm195_vm2, %v301_v52  ;;  %v434_v12 = vld [vmem:[%s1168_s3 + $0x40] sm:$0xff] }
  0x17   :  { %316 = vperm.xlu0 %941, %v306_v17  }
  0x18   :  { %311 = vperm.xlu1 %942, %v305_v18  }
  0x1b   :  { %459 = vperm.xlu0 %941, %v441_v19  }
  0x1c   :  { %454 = vperm.xlu1 %942, %v440_v20  }
  0x1f   :  { %449 = vperm.xlu0 %941, %v439_v21  }
  0x20   :  { %444 = vperm.xlu1 %942, %v438_v22  }
  0x23   :  { %592 = vperm.xlu0 %941, %v574_v23  }
  0x24   :  { %587 = vperm.xlu1 %942, %v573_v24  }
  0x27   :  { %582 = vperm.xlu0 %941, %v572_v25  }
  0x28   :  { %577 = vperm.xlu1 %942, %v571_v26  }
  0x2b   :  { %704 = vperm.xlu0 %941, %v701_v27  }
  0x7d   :  { %v55_v29 = vpop.permute.xlu0 %54 }
  0x7f   :  { %v45_v30 = vpop.permute.xlu1 %44 }
  0x81   :  { %v50_v34 = vpop.permute.xlu0 %49 }
  0x83   :  { %v40_v37 = vpop.permute.xlu1 %39 }
  0x86   :  { %v193_v53 = vpop.permute.xlu0 %192 }
  0x87   :  { %v188_v54 = vpop.permute.xlu1 %187 }
  0x8a   :  { %v183_v57 = vpop.permute.xlu0 %182 }
  0x8b   :  { %v178_v61 = vpop.permute.xlu1 %177 }
  0x8e   :  { %v327_v13 = vpop.permute.xlu0 %326 }
  0x8f   :  { %v322_v14 = vpop.permute.xlu1 %321 }
  0x92   :  { %v317_v17 = vpop.permute.xlu0 %316 }
  0x93   :  { %v312_v21 = vpop.permute.xlu1 %311 }
  0xc6   :  { %v866_v31 = vpop.f32.mrf.mxu0 }
  0xc7   :  { %v146_v35 = vadd.f32 %v866_v31, %v45_v30 }
  0xc8   :  { %v140_v32 = vpop.f32.mrf.mxu0 }
  0xc9   :  { %v141_v39 = vadd.f32 %v140_v32, %v40_v37  ;;  %v160_v42 = vmul.f32 0.01, %v146_v35  ;;  %v460_v37 = vpop.permute.xlu0 %459 }
  0xca   :  { %v869_v33 = vpop.f32.mrf.mxu0 }
  0xcb   :  { %v156_v36 = vadd.f32 %v869_v33, %v55_v29  ;;  %v159_v45 = vmul.f32 0.01, %v141_v39  ;;  %v164_v47 = vmax.f32 %v146_v35, %v160_v42  ;;  %v435_v33 = vld [vmem:[%s1168_s3 + $0x48] sm:$0xff]  ;;  %v437_v35 = vld [vmem:[%s1168_s3 + $0x58] sm:$0xff] }
  0xcc   :  { %v150_v38 = vpop.f32.mrf.mxu0 }
  0xcd   :  { %v162_v40 = vmul.f32 0.01, %v156_v36  ;;  %v151_v41 = vadd.f32 %v150_v38, %v50_v34  ;;  %v163_v48 = vmax.f32 %v141_v39, %v159_v45  ;;  %v436_v34 = vld [vmem:[%s1168_s3 + $0x50] sm:$0xff]  ;;  %v455_v38 = vpop.permute.xlu1 %454 }
  0xcf   :  { %v161_v43 = vmul.f32 0.01, %v151_v41  ;;  %v166_v44 = vmax.f32 %v156_v36, %v162_v40  ;;  %v567_v36 = vld [vmem:[%s1168_s3 + $0x60] sm:$0xff] }
  0xd1   :  { %v165_v46 = vmax.f32 %v151_v41, %v161_v43  ;;  %870 = vmatprep.subr.mxu1 %v166_v44  ;;  %v450_v41 = vpop.permute.xlu0 %449  ;;  %v445_v45 = vpop.permute.xlu1 %444 }
  0xd2   :  { %871 = vmatpush3.msra.mxu1 %v166_v44 }
  0xd3   :  { %872 = vmatprep.subr.mxu1 %v165_v46 }
  0xd4   :  { %873 = vmatpush3.msra.mxu1 %v165_v46 }
  0xd5   :  { %874 = vmatprep.subr.mxu1 %v164_v47 }
  0xd6   :  { %875 = vmatpush3.msra.mxu1 %v164_v47 }
  0xd7   :  { %876 = vmatprep.subr.mxu1 %v163_v48 }
  0xd8   :  { %877 = vmatpush3.msra.mxu1 %v163_v48 }
  0xd9   :  { %879 = vmatmul.mubr.msk.f32.vlgmr.msra.gmra.mxu1 %vm195_vm2, %v168_v49 }
  0xda   :  { %881 = vmatprep.mubr.msk.f32.mxu1 %vm195_vm2, %v169_v50 }
  0xdd   :  { %882 = vmatmul.mubr.msk.f32.gmra.mxu1 %vm195_vm2, %v170_v51 }
  0xde   :  { %906 = vmatprep.mubr.msk.f32.mxu1 %vm195_vm2, %v434_v12 }
 0x199   :  { %v880_v55 = vpop.f32.mrf.mxu1 }
 0x19a   :  { %v280_v59 = vadd.f32 %v880_v55, %v183_v57  ;;  %v568_v57 = vld [vmem:[%s1168_s3 + $0x68] sm:$0xff] }
 0x19b   :  { %v274_v56 = vpop.f32.mrf.mxu1 }
 0x19c   :  { %v275_v63 = vadd.f32 %v274_v56, %v178_v61  ;;  %v294_v2 = vmul.f32 0.01, %v280_v59  ;;  %v593_v61 = vpop.permute.xlu0 %592 }
 0x19d   :  { %v883_v58 = vpop.f32.mrf.mxu1 }
 0x19e   :  { %v290_v60 = vadd.f32 %v883_v58, %v193_v53  ;;  %v293_v5 = vmul.f32 0.01, %v275_v63  ;;  %v298_v7 = vmax.f32 %v280_v59, %v294_v2  ;;  %v569_v58 = vld [vmem:[%s1168_s3 + $0x70] sm:$0xff]  ;;  %v570_v59 = vld [vmem:[%s1168_s3 + $0x78] sm:$0xff] }
 0x19f   :  { %v284_v62 = vpop.f32.mrf.mxu1 }
 0x1a0   :  { %v296_v0 = vmul.f32 0.01, %v290_v60  ;;  %v285_v1 = vadd.f32 %v284_v62, %v188_v54  ;;  %v297_v8 = vmax.f32 %v275_v63, %v293_v5  ;;  %v588_v62 = vpop.permute.xlu1 %587 }
 0x1a2   :  { %v300_v3 = vmax.f32 %v290_v60, %v296_v0  ;;  %v295_v4 = vmul.f32 0.01, %v285_v1  ;;  %v966_v60 = vmov 0.0  }
 0x1a4   :  { %v299_v6 = vmax.f32 %v285_v1, %v295_v4  ;;  %884 = vmatprep.subr.mxu0 %v300_v3  ;;  %v583_v1 = vpop.permute.xlu0 %582  ;;  %v578_v5 = vpop.permute.xlu1 %577 }
 0x1a5   :  { %885 = vmatpush3.msra.mxu0 %v300_v3 }
 0x1a6   :  { %886 = vmatprep.subr.mxu0 %v299_v6 }
 0x1a7   :  { %887 = vmatpush3.msra.mxu0 %v299_v6 }
 0x1a8   :  { %888 = vmatprep.subr.mxu0 %v298_v7 }
 0x1a9   :  { %889 = vmatpush3.msra.mxu0 %v298_v7 }
 0x1aa   :  { %890 = vmatprep.subr.mxu0 %v297_v8 }
 0x1ab   :  { %891 = vmatpush3.msra.mxu0 %v297_v8 }
 0x1ac   :  { %893 = vmatmul.mubr.msk.f32.vlgmr.msra.gmra.mxu0 %vm195_vm2, %v302_v9 }
 0x1ad   :  { %895 = vmatprep.mubr.msk.f32.mxu0 %vm195_vm2, %v303_v10 }
 0x1b0   :  { %896 = vmatmul.mubr.msk.f32.gmra.mxu0 %vm195_vm2, %v304_v11 }
 0x1b1   :  { %920 = vmatprep.mubr.msk.f32.mxu0 %vm195_vm2, %v567_v36 }
 0x26c   :  { %v894_v15 = vpop.f32.mrf.mxu0 }
 0x26d   :  { %v413_v19 = vadd.f32 %v894_v15, %v317_v17  ;;  %v700_v17 = vld [vmem:[%s1170_s5] sm:$0xff] }
 0x26e   :  { %v407_v16 = vpop.f32.mrf.mxu0 }
 0x26f   :  { %v408_v23 = vadd.f32 %v407_v16, %v312_v21  ;;  %v427_v26 = vmul.f32 0.01, %v413_v19 }
 0x270   :  { %v897_v18 = vpop.f32.mrf.mxu0 }
 0x271   :  { %v423_v20 = vadd.f32 %v897_v18, %v327_v13  ;;  %v426_v29 = vmul.f32 0.01, %v408_v23  ;;  %v431_v31 = vmax.f32 %v413_v19, %v427_v26  ;;  %v705_v18 = vpop.permute.xlu0 %704 }
 0x272   :  { %v417_v22 = vpop.f32.mrf.mxu0 }
 0x273   :  { %v429_v24 = vmul.f32 0.01, %v423_v20  ;;  %v418_v25 = vadd.f32 %v417_v22, %v322_v14  ;;  %v430_v32 = vmax.f32 %v408_v23, %v426_v29 }
 0x275   :  { %v433_v27 = vmax.f32 %v423_v20, %v429_v24  ;;  %v428_v28 = vmul.f32 0.01, %v418_v25 }
 0x277   :  { %v432_v30 = vmax.f32 %v418_v25, %v428_v28  ;;  %898 = vmatprep.subr.mxu1 %v433_v27 }
 0x278   :  { %899 = vmatpush3.msra.mxu1 %v433_v27 }
 0x279   :  { %900 = vmatprep.subr.mxu1 %v432_v30 }
 0x27a   :  { %901 = vmatpush3.msra.mxu1 %v432_v30 }
 0x27b   :  { %902 = vmatprep.subr.mxu1 %v431_v31 }
 0x27c   :  { %903 = vmatpush3.msra.mxu1 %v431_v31 }
 0x27d   :  { %904 = vmatprep.subr.mxu1 %v430_v32 }
 0x27e   :  { %905 = vmatpush3.msra.mxu1 %v430_v32 }
 0x27f   :  { %907 = vmatmul.mubr.msk.f32.vlgmr.msra.gmra.mxu1 %vm195_vm2, %v435_v33  ;;  %926 = vmatprep.subr.mxu1 %v966_v60 }
 0x280   :  { %909 = vmatprep.mubr.msk.f32.mxu1 %vm195_vm2, %v436_v34 }
 0x283   :  { %910 = vmatmul.mubr.msk.f32.gmra.mxu1 %vm195_vm2, %v437_v35 }
 0x284   :  { %934 = vmatprep.mubr.msk.f32.mxu1 %vm967_vm3, %v966_v60 }
 0x33f   :  { %v908_v39 = vpop.f32.mrf.mxu1 }
 0x340   :  { %v546_v43 = vadd.f32 %v908_v39, %v450_v41 }
 0x341   :  { %v540_v40 = vpop.f32.mrf.mxu1 }
 0x342   :  { %v541_v47 = vadd.f32 %v540_v40, %v445_v45  ;;  %v560_v50 = vmul.f32 0.01, %v546_v43 }
 0x343   :  { %v911_v42 = vpop.f32.mrf.mxu1 }
 0x344   :  { %v556_v44 = vadd.f32 %v911_v42, %v460_v37  ;;  %v559_v53 = vmul.f32 0.01, %v541_v47  ;;  %v564_v55 = vmax.f32 %v546_v43, %v560_v50 }
 0x345   :  { %v550_v46 = vpop.f32.mrf.mxu1 }
 0x346   :  { %v562_v48 = vmul.f32 0.01, %v556_v44  ;;  %v551_v49 = vadd.f32 %v550_v46, %v455_v38  ;;  %v563_v56 = vmax.f32 %v541_v47, %v559_v53 }
 0x348   :  { %v566_v51 = vmax.f32 %v556_v44, %v562_v48  ;;  %v561_v52 = vmul.f32 0.01, %v551_v49 }
 0x34a   :  { %v565_v54 = vmax.f32 %v551_v49, %v561_v52  ;;  %912 = vmatprep.subr.mxu0 %v566_v51 }
 0x34b   :  { %913 = vmatpush3.msra.mxu0 %v566_v51 }
 0x34c   :  { %914 = vmatprep.subr.mxu0 %v565_v54 }
 0x34d   :  { %915 = vmatpush3.msra.mxu0 %v565_v54 }
 0x34e   :  { %916 = vmatprep.subr.mxu0 %v564_v55 }
 0x34f   :  { %917 = vmatpush3.msra.mxu0 %v564_v55 }
 0x350   :  { %918 = vmatprep.subr.mxu0 %v563_v56 }
 0x351   :  { %919 = vmatpush3.msra.mxu0 %v563_v56 }
 0x352   :  { %921 = vmatmul.mubr.msk.f32.vlgmr.msra.gmra.mxu0 %vm195_vm2, %v568_v57 }
 0x353   :  { %923 = vmatprep.mubr.msk.f32.mxu0 %vm195_vm2, %v569_v58 }
 0x356   :  { %924 = vmatmul.mubr.msk.f32.gmra.mxu0 %vm195_vm2, %v570_v59 }
 0x412   :  { %v922_v63 = vpop.f32.mrf.mxu0 }
 0x413   :  { %v679_v3 = vadd.f32 %v922_v63, %v583_v1 }
 0x414   :  { %v673_v0 = vpop.f32.mrf.mxu0 }
 0x415   :  { %v674_v7 = vadd.f32 %v673_v0, %v578_v5  ;;  %v693_v10 = vmul.f32 0.01, %v679_v3 }
 0x416   :  { %v925_v2 = vpop.f32.mrf.mxu0 }
 0x417   :  { %v689_v4 = vadd.f32 %v925_v2, %v593_v61  ;;  %v692_v13 = vmul.f32 0.01, %v674_v7  ;;  %v697_v15 = vmax.f32 %v679_v3, %v693_v10 }
 0x418   :  { %v683_v6 = vpop.f32.mrf.mxu0 }
 0x419   :  { %v695_v8 = vmul.f32 0.01, %v689_v4  ;;  %v684_v9 = vadd.f32 %v683_v6, %v588_v62  ;;  %v696_v16 = vmax.f32 %v674_v7, %v692_v13 }
 0x41b   :  { %v699_v11 = vmax.f32 %v689_v4, %v695_v8  ;;  %v694_v12 = vmul.f32 0.01, %v684_v9 }
 0x41d   :  { %v698_v14 = vmax.f32 %v684_v9, %v694_v12  ;;  %927 = vmatpush3.msra.mxu1 %v699_v11 }
 0x41e   :  { %928 = vmatprep.subr.mxu1 %v966_v60 }
 0x41f   :  { %929 = vmatpush3.msra.mxu1 %v698_v14 }
 0x420   :  { %930 = vmatprep.subr.mxu1 %v966_v60 }
 0x421   :  { %931 = vmatpush3.msra.mxu1 %v697_v15 }
 0x422   :  { %932 = vmatprep.subr.mxu1 %v966_v60 }
 0x423   :  { %933 = vmatpush3.msra.mxu1 %v696_v16 }
 0x424   :  { %935 = vmatmul.mubr.msk.f32.vlgmr.msra.gmra.mxu1 %vm195_vm2, %v700_v17 }
 0x4e4   :  { %v776_v19 = vpop.f32.mrf.mxu1 }
 0x4e5   :  { %v777_v20 = vadd.f32 %v776_v19, %v705_v18 }
 0x4e6   :  { %v936_v21 = vpop.f32.mrf.mxu1 }
 0x4e7   :  { %780 = vst [vmem:[#allocation2] sm:$0xff] %v777_v20 }
 0x4e8   :  { %954 = shalt.err (!%p951_p4)
}
 0x4e9   :  { %790 = dma.vmem_to_hbm [thread:$0]  %s788_s30, 128, %s1172_s7, [#allocation3]  }
 0x4ea   :  { %963 = dma.done.wait [#allocation3], 128  }
 0x4eb   :  { %964 = vsyncadd [#allocation3], 4294967168 }
 0x4ec   :  { %794 = vsyncpa [#allocation3], 1 }

</bundles_post_ra>
